<compile_context>
chip_gen: v6e
topology: v6e:2x2x1
jax: 0.10.0
libtpu: 0.0.40
codegen_flags: <defaults>
</compile_context>

<pallas_src>
import functools
import math

import jax
import jax.numpy as jnp
from jax.experimental import pallas as pl
from jax.experimental.pallas import tpu as pltpu


def _round_up(x, m):
    return ((x + m - 1) // m) * m


def _decomp_kernel(x_tile_ref, x_hbm_ref, res_ref, mean_ref, *scratch, kernel_size,
                   pad, pad_al, tile_len, bb, num_time_tiles, row_chunk, group):
    # x_tile_ref : (BB, TL, C)   auto-pipelined tile of x
    # x_hbm_ref  : (B, Lp, C)    raw HBM ref (halo rows only)
    # win_ref    : (BB, N, C)    window buffer; extended series lives at rows
    #                            [pad_al - pad, pad_al + TL + pad)
    # psum_ref   : (BB, N, C) f32  width-`group` partial sums (two-level path only)
    if group is not None:
        win_ref, dma_sems, psum_ref = scratch
    else:
        win_ref, dma_sems = scratch
        psum_ref = None

    b = pl.program_id(0)       # == batch index whenever halo DMAs run (BB == 1 then)
    t = pl.program_id(1)
    TL = tile_len
    C = x_tile_ref.shape[-1]
    off = pad_al - pad         # start of the extended series inside win_ref
    multi = num_time_tiles > 1
    k = kernel_size

    def _head_copy():
        return pltpu.make_async_copy(
            x_hbm_ref.at[b, pl.ds(t * TL - pad, pad), :],
            win_ref.at[0, pl.ds(off, pad), :],
            dma_sems.at[0])

    def _tail_copy():
        return pltpu.make_async_copy(
            x_hbm_ref.at[b, pl.ds((t + 1) * TL, pad), :],
            win_ref.at[0, pl.ds(pad_al + TL, pad), :],
            dma_sems.at[1])

    if pad > 0 and multi:
        # Tiny halo DMAs are started first so they overlap the tile copy below.
        @pl.when(t > 0)
        def _():
            _head_copy().start()

        @pl.when(t < num_time_tiles - 1)
        def _():
            _tail_copy().start()

    # ---- chunked-loop helper (bounds vreg live ranges) ----
    def _for_chunks(total, fn):
        full = total // row_chunk
        rem = total - full * row_chunk
        if full > 0:
            def body(c, carry):
                s = c * row_chunk
                if row_chunk % 8 == 0:
                    s = pl.multiple_of(s, 8)
                fn(s, row_chunk)
                return carry
            jax.lax.fori_loop(0, full, body, 0)
        if rem > 0:
            fn(full * row_chunk, rem)

    # Sublane-aligned copy of this tile into the middle of the window buffer.
    def _copy_chunk(s, n):
        win_ref[:, pl.ds(pad_al + s, n), :] = x_tile_ref[:, pl.ds(s, n), :]

    _for_chunks(TL, _copy_chunk)

    if pad > 0:
        # Edge replication at the sequence boundaries (in-kernel, no HBM pad copy).
        @pl.when(t == 0)
        def _():
            win_ref[:, pl.ds(off, pad), :] = jnp.broadcast_to(
                x_tile_ref[:, 0:1, :], (bb, pad, C))

        @pl.when(t == num_time_tiles - 1)
        def _():
            win_ref[:, pl.ds(pad_al + TL, pad), :] = jnp.broadcast_to(
                x_tile_ref[:, TL - 1:TL, :], (bb, pad, C))

    if pad > 0 and multi:
        @pl.when(t > 0)
        def _():
            _head_copy().wait()

        @pl.when(t < num_time_tiles - 1)
        def _():
            _tail_copy().wait()

    inv_k = 1.0 / k

    # ---- stage 1 (two-level path only): width-g partial sums into psum_ref ----
    if group is not None:
        g = group
        q, r = divmod(k, g)
        build_len = off + TL + 2 * pad - g + 1   # psum rows needed (win coordinates)

        def _build(s, n):
            acc = win_ref[:, pl.ds(s, n), :].astype(jnp.float32)
            for j in range(1, g):
                acc = acc + win_ref[:, pl.ds(s + j, n), :].astype(jnp.float32)
            psum_ref[:, pl.ds(s, n), :] = acc

        _for_chunks(build_len, _build)

    # ---- stage 2: windowed mean + residual, chunked over output rows ----
    def _emit(base, n):
        wb = base + off
        if group is not None:
            g = group
            q, r = divmod(k, g)
            acc = psum_ref[:, pl.ds(wb, n), :]
            for u in range(1, q):
                acc = acc + psum_ref[:, pl.ds(wb + u * g, n), :]
            for j in range(r):
                acc = acc + win_ref[:, pl.ds(wb + q * g + j, n), :].astype(jnp.float32)
        else:
            acc = win_ref[:, pl.ds(wb, n), :].astype(jnp.float32)
            for j in range(1, k):
                acc = acc + win_ref[:, pl.ds(wb + j, n), :].astype(jnp.float32)
        mean = acc * inv_k
        xv = x_tile_ref[:, pl.ds(base, n), :].astype(jnp.float32)
        mean_ref[:, pl.ds(base, n), :] = mean.astype(mean_ref.dtype)
        res_ref[:, pl.ds(base, n), :] = (xv - mean).astype(res_ref.dtype)

    _for_chunks(TL, _emit)


def moving_average_decomposition(x, kernel_size, *, time_tile=None, batch_block=None):
    """x: (B, L, C).  Returns (residual, moving_mean), both (B, L, C)."""
    assert x.ndim == 3
    assert kernel_size >= 1 and kernel_size % 2 == 1, \
        "kernel_size must be odd (matches the PyTorch module's shape semantics)"
    B, L, C = x.shape
    pad = (kernel_size - 1) // 2
    itemsize = jnp.dtype(x.dtype).itemsize
    sub = {4: 8, 2: 16, 1: 32}.get(itemsize, 8)   # native sublane multiple for the dtype

    # Generation-aware VMEM budget (v5e/v6e: 128 MiB physical, v7x: 64 MiB per TC).
    vmem_cap = 64 * 1024 * 1024
    try:
        info = pltpu.get_tpu_info()
        vmem_cap = int(getattr(info, "vmem_capacity_bytes", vmem_cap)) or vmem_cap
    except Exception:
        pass
    usable = (3 * vmem_cap) // 4
    block_budget = max(1 << 20, min(4 << 20, usable // 10))   # ~1-4 MiB per block

    row_bytes = C * itemsize
    min_rows = max(sub, _round_up(max(pad, 1), sub))

    # ---- time tiling (edge-pad L if it has no clean divisor) ----
    if time_tile is not None:
        TL = int(time_tile)
        L_pad = _round_up(L, TL)
        if L_pad > TL:   # multi-tile
            assert TL % sub == 0, "time_tile must be a multiple of %d for this dtype" % sub
            assert TL >= pad, "time_tile must be >= (kernel_size - 1) // 2"
    elif L * row_bytes <= block_budget:
        TL, L_pad = L, L
    else:
        target = max(min_rows, ((block_budget // row_bytes) // sub) * sub)
        TL = None
        for cand in range(target, min_rows - 1, -sub):
            if L % cand == 0:
                TL = cand
                break
        if TL is None:          # no clean divisor: pad L up instead of one huge block
            TL = target
        L_pad = _round_up(L, TL)
    T = L_pad // TL

    # ---- batch blocking (only when the whole series fits in one time tile) ----
    if T == 1:
        if batch_block is not None:
            BB = int(batch_block)
        else:
            BB = 1
            max_bb = max(1, block_budget // max(1, TL * row_bytes))
            for cand in range(min(B, max_bb), 0, -1):
                if B % cand == 0:
                    BB = cand
                    break
            # keep >= 2 grid steps so both v7x TensorCores get work
            if BB == B and B >= 2:
                for cand in range(B // 2, 0, -1):
                    if B % cand == 0:
                        BB = cand
                        break
        assert B % BB == 0
    else:
        BB = 1

    # ---- in-kernel row-chunk size (~64 KiB f32 accumulator per chunk) ----
    if TL % sub == 0:
        rc = max(sub, ((65536 // max(1, BB * C * 4)) // sub) * sub)
        RC = min(TL, rc)
    else:
        RC = TL   # only possible for a single small full-length tile

    # two-level (sqrt(k)-blocked) window sum for larger kernels
    g = int(round(math.sqrt(kernel_size)))
    use_two_level = kernel_size >= 9 and 2 <= g < kernel_size
    group = g if use_two_level else None

    pad_al = _round_up(pad, sub) if pad > 0 else 0
    N = 2 * pad_al + TL

    x_in = x
    if L_pad > L:
        # Edge-pad the end; identical result because the op itself edge-replicates.
        x_in = jnp.pad(x, ((0, 0), (0, L_pad - L), (0, 0)), mode="edge")

    scratch_shapes = [
        pltpu.VMEM((BB, N, C), x.dtype),
        pltpu.SemaphoreType.DMA((2,)),
    ]
    if use_two_level:
        scratch_shapes.append(pltpu.VMEM((BB, N, C), jnp.float32))

    block_bytes = BB * TL * C * itemsize
    win_bytes = BB * N * C * itemsize
    psum_bytes = BB * N * C * 4 if use_two_level else 0
    needed = 6 * block_bytes + win_bytes + psum_bytes + (4 << 20)
    vmem_limit = int(min(max(needed, 16 << 20), usable))

    kernel = functools.partial(
        _decomp_kernel,
        kernel_size=kernel_size, pad=pad, pad_al=pad_al, tile_len=TL, bb=BB,
        num_time_tiles=T, row_chunk=RC, group=group)

    residual, moving_mean = pl.pallas_call(
        kernel,
        out_shape=(
            jax.ShapeDtypeStruct((B, L_pad, C), x.dtype),
            jax.ShapeDtypeStruct((B, L_pad, C), x.dtype),
        ),
        grid=(B // BB, T),
        in_specs=[
            pl.BlockSpec((BB, TL, C), lambda bi, ti: (bi, ti, 0)),  # streamed tile of x
            pl.BlockSpec(memory_space=pl.ANY),                      # raw HBM x (halo rows)
        ],
        out_specs=(
            pl.BlockSpec((BB, TL, C), lambda bi, ti: (bi, ti, 0)),
            pl.BlockSpec((BB, TL, C), lambda bi, ti: (bi, ti, 0)),
        ),
        scratch_shapes=scratch_shapes,
        compiler_params=pltpu.CompilerParams(
            dimension_semantics=("parallel", "parallel"),
            vmem_limit_bytes=vmem_limit,
        ),
    )(x_in, x_in)

    if L_pad > L:
        residual = residual[:, :L, :]
        moving_mean = moving_mean[:, :L, :]
    return residual, moving_mean


def _reference(x, kernel_size):
    # Pure-JAX reference mirroring the PyTorch forward.
    pad = (kernel_size - 1) // 2
    front = jnp.repeat(x[:, 0:1, :], pad, axis=1)
    end = jnp.repeat(x[:, -1:, :], pad, axis=1)
    xp = jnp.concatenate([front, x, end], axis=1)
    L = x.shape[1]
    mean = sum(xp[:, j:j + L, :] for j in range(kernel_size)) / kernel_size
    return x - mean, mean


if __name__ == "__main__":
    root = jax.random.PRNGKey(0)
    k1, k2, k3, k4, k5 = jax.random.split(root, 5)

    def check(x, ksize, tol, **kw):
        res, mean = moving_average_decomposition(x, ksize, **kw)
        jax.block_until_ready((res, mean))
        res_ref, mean_ref = _reference(x, ksize)
        assert jnp.allclose(res, res_ref, atol=tol, rtol=tol), "residual mismatch"
        assert jnp.allclose(mean, mean_ref, atol=tol, rtol=tol), "mean mismatch"

    # 1) module-scale shapes: single time tile, edge fills only, direct-sum path.
    check(jax.random.normal(k1, (2, 8, 32), dtype=jnp.float32), 5, 1e-5)
    # 2) forced time tiling: halo-DMA path (first / interior / last tiles).
    check(jax.random.normal(k2, (2, 32, 128), dtype=jnp.float32), 5, 1e-5, time_tile=8)
    # 3) large kernel: two-level (sqrt-blocked) window-sum path + halos.
    check(jax.random.normal(k3, (2, 64, 128), dtype=jnp.float32), 25, 1e-4, time_tile=16)
    # 4) batch-blocked path (whole series per block, BB > 1).
    check(jax.random.normal(k4, (8, 16, 32), dtype=jnp.float32), 5, 1e-5)
    # 5) sequence length with no clean tile divisor -> wrapper edge-pads L.
    check(jax.random.normal(k5, (2, 20, 32), dtype=jnp.float32), 5, 1e-5, time_tile=8)

    print("KERNEL_OK")
</pallas_src>

<mosaic_0001>
module attributes {stable_mosaic.version = 11 : i64} {
  func.func @_decomp_kernel(%arg0: i32, %arg1: i32, %arg2: memref<1x8x32xf32, #tpu.memory_space<vmem>>, %arg3: memref<2x8x32xf32, #tpu.memory_space<any>>, %arg4: memref<1x8x32xf32, #tpu.memory_space<vmem>>, %arg5: memref<1x8x32xf32, #tpu.memory_space<vmem>>, %arg6: memref<1x24x32xf32, #tpu.memory_space<vmem>>, %arg7: memref<2x!tpu.dma_semaphore, #tpu.memory_space<semaphore_mem>>) attributes {dimension_semantics = [#tpu.dimension_semantics<parallel>, #tpu.dimension_semantics<parallel>], iteration_bounds = array<i64: 2, 1>, scalar_prefetch = 0 : i64, scratch_operands = 2 : i64, tpu.core_type = #tpu.core_type<tc>, window_params = [{transform_indices = @transform_0, window_bounds = array<i64: 1, 8, 32>}, {}, {transform_indices = @transform_2, window_bounds = array<i64: 1, 8, 32>}, {transform_indices = @transform_3, window_bounds = array<i64: 1, 8, 32>}]} {
    %c0_i32 = arith.constant 0 : i32
    %c8_i32 = arith.constant 8 : i32
    %0 = arith.muli %c0_i32, %c8_i32 : i32
    %1 = tpu.assume_multiple %0, 8 : i32
    %c0 = arith.constant 0 : index
    %2 = arith.index_cast %1 : i32 to index
    %c0_0 = arith.constant 0 : index
    %3 = vector.load %arg2[%c0, %2, %c0_0] : memref<1x8x32xf32, #tpu.memory_space<vmem>>, vector<1x8x32xf32>
    %c8_i32_1 = arith.constant 8 : i32
    %4 = arith.addi %c8_i32_1, %1 : i32
    %c0_2 = arith.constant 0 : index
    %5 = arith.index_cast %4 : i32 to index
    %c0_3 = arith.constant 0 : index
    %6 = vector.load %arg6[%c0_2, %5, %c0_3] : memref<1x24x32xf32, #tpu.memory_space<vmem>>, vector<1x8x32xf32>
    tpu.vector_store %arg6[%c0_2, %5, %c0_3], %3 {strides = array<i32>} : memref<1x24x32xf32, #tpu.memory_space<vmem>>, vector<1x8x32xf32>,
    %c1_i32 = arith.constant 1 : i32
    %c0_i32_4 = arith.constant 0 : i32
    %7 = arith.cmpi eq, %arg1, %c0_i32_4 : i32
    %8 = arith.extui %7 : i1 to i32
    %c0_i32_5 = arith.constant 0 : i32
    %9 = arith.cmpi ne, %8, %c0_i32_5 : i32
    scf.if %9 {
      %c0_28 = arith.constant 0 : index
      %c0_29 = arith.constant 0 : index
      %c0_30 = arith.constant 0 : index
      %43 = vector.load %arg2[%c0_28, %c0_29, %c0_30] : memref<1x8x32xf32, #tpu.memory_space<vmem>>, vector<1x1x32xf32>
      %44 = vector.shape_cast %43 : vector<1x1x32xf32> to vector<1x1x32xf32>
      %45 = vector.broadcast %44 : vector<1x1x32xf32> to vector<1x2x32xf32>
      %c0_31 = arith.constant 0 : index
      %c6 = arith.constant 6 : index
      %c0_32 = arith.constant 0 : index
      %46 = vector.load %arg6[%c0_31, %c6, %c0_32] : memref<1x24x32xf32, #tpu.memory_space<vmem>>, vector<1x2x32xf32>
      tpu.vector_store %arg6[%c0_31, %c6, %c0_32], %45 {strides = array<i32>} : memref<1x24x32xf32, #tpu.memory_space<vmem>>, vector<1x2x32xf32>,
    } else {
    }
    %c0_i32_6 = arith.constant 0 : i32
    %10 = arith.cmpi eq, %arg1, %c0_i32_6 : i32
    %11 = arith.extui %10 : i1 to i32
    %c0_i32_7 = arith.constant 0 : i32
    %12 = arith.cmpi ne, %11, %c0_i32_7 : i32
    scf.if %12 {
      %c0_28 = arith.constant 0 : index
      %c7 = arith.constant 7 : index
      %c0_29 = arith.constant 0 : index
      %43 = vector.load %arg2[%c0_28, %c7, %c0_29] : memref<1x8x32xf32, #tpu.memory_space<vmem>>, vector<1x1x32xf32>
      %44 = vector.shape_cast %43 : vector<1x1x32xf32> to vector<1x1x32xf32>
      %45 = vector.broadcast %44 : vector<1x1x32xf32> to vector<1x2x32xf32>
      %c0_30 = arith.constant 0 : index
      %c16 = arith.constant 16 : index
      %c0_31 = arith.constant 0 : index
      %46 = vector.load %arg6[%c0_30, %c16, %c0_31] : memref<1x24x32xf32, #tpu.memory_space<vmem>>, vector<1x2x32xf32>
      tpu.vector_store %arg6[%c0_30, %c16, %c0_31], %45 {strides = array<i32>} : memref<1x24x32xf32, #tpu.memory_space<vmem>>, vector<1x2x32xf32>,
    } else {
    }
    %c0_i32_8 = arith.constant 0 : i32
    %c8_i32_9 = arith.constant 8 : i32
    %13 = arith.muli %c0_i32_8, %c8_i32_9 : i32
    %14 = tpu.assume_multiple %13, 8 : i32
    %c6_i32 = arith.constant 6 : i32
    %15 = arith.addi %14, %c6_i32 : i32
    %c0_10 = arith.constant 0 : index
    %16 = arith.index_cast %15 : i32 to index
    %c0_11 = arith.constant 0 : index
    %17 = vector.load %arg6[%c0_10, %16, %c0_11] : memref<1x24x32xf32, #tpu.memory_space<vmem>>, vector<1x8x32xf32>
    %c1_i32_12 = arith.constant 1 : i32
    %18 = arith.addi %15, %c1_i32_12 : i32
    %c0_13 = arith.constant 0 : index
    %19 = arith.index_cast %18 : i32 to index
    %c0_14 = arith.constant 0 : index
    %20 = vector.load %arg6[%c0_13, %19, %c0_14] : memref<1x24x32xf32, #tpu.memory_space<vmem>>, vector<1x8x32xf32>
    %21 = arith.addf %17, %20 : vector<1x8x32xf32>
    %c2_i32 = arith.constant 2 : i32
    %22 = arith.addi %15, %c2_i32 : i32
    %c0_15 = arith.constant 0 : index
    %23 = arith.index_cast %22 : i32 to index
    %c0_16 = arith.constant 0 : index
    %24 = vector.load %arg6[%c0_15, %23, %c0_16] : memref<1x24x32xf32, #tpu.memory_space<vmem>>, vector<1x8x32xf32>
    %25 = arith.addf %21, %24 : vector<1x8x32xf32>
    %c3_i32 = arith.constant 3 : i32
    %26 = arith.addi %15, %c3_i32 : i32
    %c0_17 = arith.constant 0 : index
    %27 = arith.index_cast %26 : i32 to index
    %c0_18 = arith.constant 0 : index
    %28 = vector.load %arg6[%c0_17, %27, %c0_18] : memref<1x24x32xf32, #tpu.memory_space<vmem>>, vector<1x8x32xf32>
    %29 = arith.addf %25, %28 : vector<1x8x32xf32>
    %c4_i32 = arith.constant 4 : i32
    %30 = arith.addi %15, %c4_i32 : i32
    %c0_19 = arith.constant 0 : index
    %31 = arith.index_cast %30 : i32 to index
    %c0_20 = arith.constant 0 : index
    %32 = vector.load %arg6[%c0_19, %31, %c0_20] : memref<1x24x32xf32, #tpu.memory_space<vmem>>, vector<1x8x32xf32>
    %33 = arith.addf %29, %32 : vector<1x8x32xf32>
    %cst = arith.constant 2.000000e-01 : f32
    %34 = vector.broadcast %cst : f32 to vector<1x8x32xf32>
    %35 = arith.mulf %33, %34 : vector<1x8x32xf32>
    %c0_21 = arith.constant 0 : index
    %36 = arith.index_cast %14 : i32 to index
    %c0_22 = arith.constant 0 : index
    %37 = vector.load %arg2[%c0_21, %36, %c0_22] : memref<1x8x32xf32, #tpu.memory_space<vmem>>, vector<1x8x32xf32>
    %c0_23 = arith.constant 0 : index
    %38 = arith.index_cast %14 : i32 to index
    %c0_24 = arith.constant 0 : index
    %39 = vector.load %arg5[%c0_23, %38, %c0_24] : memref<1x8x32xf32, #tpu.memory_space<vmem>>, vector<1x8x32xf32>
    tpu.vector_store %arg5[%c0_23, %38, %c0_24], %35 {strides = array<i32>} : memref<1x8x32xf32, #tpu.memory_space<vmem>>, vector<1x8x32xf32>,
    %40 = arith.subf %37, %35 : vector<1x8x32xf32>
    %c0_25 = arith.constant 0 : index
    %41 = arith.index_cast %14 : i32 to index
    %c0_26 = arith.constant 0 : index
    %42 = vector.load %arg4[%c0_25, %41, %c0_26] : memref<1x8x32xf32, #tpu.memory_space<vmem>>, vector<1x8x32xf32>
    tpu.vector_store %arg4[%c0_25, %41, %c0_26], %40 {strides = array<i32>} : memref<1x8x32xf32, #tpu.memory_space<vmem>>, vector<1x8x32xf32>,
    %c1_i32_27 = arith.constant 1 : i32
    return
  }
  func.func @transform_0(%arg0: i32, %arg1: i32) -> (i32, i32, i32) {
    %c0_i32 = arith.constant 0 : i32
    %c0_i32_0 = arith.constant 0 : i32
    return %arg0, %arg1, %c0_i32 : i32, i32, i32
  }
  func.func @transform_2(%arg0: i32, %arg1: i32) -> (i32, i32, i32) {
    %c0_i32 = arith.constant 0 : i32
    %c0_i32_0 = arith.constant 0 : i32
    return %arg0, %arg1, %c0_i32 : i32, i32, i32
  }
  func.func @transform_3(%arg0: i32, %arg1: i32) -> (i32, i32, i32) {
    %c0_i32 = arith.constant 0 : i32
    %c0_i32_0 = arith.constant 0 : i32
    return %arg0, %arg1, %c0_i32 : i32, i32, i32
  }
}

</mosaic_0001>

<bundles_post_ra>
// kernel: tpu_custom_call.1
= control target key start
LH: loop header
LB: loop body
LE: loop exit
PB: predicated region body
PF: predicated region fallthrough
CT: control target
= control target key end

     0   :  { %9 = vsyncpa [#allocation5], 0  ;;  %s835_s0 = inlined_call_operand.hbm [shape: f32[2,8,32], index: 0, kind: input, shape index: {}]   ;;  %s836_s1 = inlined_call_operand.hbm [shape: f32[2,8,32], index: 1, kind: input, shape index: {}]   ;;  %s837_s2 = inlined_call_operand.hbm [shape: f32[2,8,32], index: 2, kind: output, shape index: {0}]   ;;  %s838_s3 = inlined_call_operand.hbm [shape: f32[2,8,32], index: 3, kind: output, shape index: {1}]  }
   0x1   :  { %11 = vsyncpa [#allocation5 + $0x1], 0 }
   0x2   :  { %12 = vsyncpa [#allocation6], 0 }
   0x3   :  { %14 = vsyncpa [#allocation6 + $0x1], 0 }
   0x4   :  { %15 = vsyncpa [#allocation9], 0 }
   0x5   :  { %17 = vsyncpa [#allocation9 + $0x1], 0  ;;  %s649_s12 = smov 0   ;;  %s651_s13 = smov 0  }
   0x6   :  { %s653_s14 = smov 0   ;;  %s655_s15 = smov 0  }
   0x7   :  { %s657_s1 = smov 0   ;;  %s659_s16 = smov 0  }
   0x8 LB: > { %s399_s17 = sadd.s32 4294967295, %s624_s16   ;;  %s400_s18 = sadd.s32 4294967294, %s624_s16   ;;  %s624_s16 = sphi %s659_s16, %s23_s16   ;;  %s620_s1 = sphi %s657_s1, %s850_s1   ;;  %s616_s15 = sphi %s655_s15, %s849_s15   ;;  %s612_s14 = sphi %s653_s14, %s848_s14   ;;  %s608_s13 = sphi %s651_s13, %s847_s13   ;;  %s604_s12 = sphi %s649_s12, %s846_s12  }
   0x9   : > { %s35_s19 = sadd.s32 1, %s620_s1  ;;  %s44_s20 = sadd.s32 1, %s612_s14 }
   0xa   : > { %p37_p0 = scmp.ge.s32.totalorder %s35_s19, 2  ;;  %p51_p1 = scmp.ne.s32.totalorder %s612_s14, %s608_s13 }
   0xb   : > { %p52_p2 = scmp.eq.s32.totalorder %s624_s16, 0  ;;  %p57_p3 = scmp.ne.s32.totalorder %s608_s13, %s604_s12 }
   0xc   : > { %s852_s19 = smov (%p37_p0, %s35_s19), 0  ;;  %p58_p5 = scmp.eq.s32.totalorder %s399_s17, 0 }
   0xd   : > { %p690_p4 = por %p52_p2, %p51_p1  ;;  %s39_s22 = ssub.s32 %s620_s1, %s852_s19 }
   0xe   : > { %p83_p6 = scmp.eq.s32.totalorder %s399_s17, 1  ;;  %p42_p7 = scmp.eq.s32.totalorder %s39_s22, 0 }
   0xf   : > { %p696_p8 = por %p58_p5, %p57_p3  ;;  %p89_p10 = scmp.eq.s32.totalorder %s400_s18, 1 }
  0x10   : > { %p700_p9 = por %p83_p6, %p51_p1  ;;  %p436_p13 = scmp.lt.s32.totalorder %s624_s16, 2 }
  0x11   : > { %s705_s25 = scalar_select %p42_p7, %s612_s14, %s44_s20  }
  0x12   : > { %p707_p11 = por %p89_p10, %p57_p3  ;;  %s137_s27 = sand.u32 1, %s612_s14  }
  0x13   : > { %s403_s28 = sshll.u32 %s137_s27, 3  ;;  %s404_s29 = sshll.u32 %s620_s1, 7 }
  0x14   : > { %s842_s26 = scalar_select %p707_p11, 1, 0 }
  0x15   : > { %s147_s5 = scalar_lea.hbm %s835_s0, %s404_s29  ;;  %s141_s6 = scalar_lea.vmem [#allocation4], %s403_s28 }
  0x16   : > { %s149_s7 = sshll.u32 %s141_s6, 4  ;;  %p720_p0 = pnand %p436_p13, %p690_p4  ;;  %s150_s7 = int_to_ptr.vmem [resolvable:$true] %s149_s7 }
  0x17   : > { %p405_p1 = scmp.ge.s32.totalorder %s624_s16, 1  ;;  %p154_p2 = scmp.lt.s32.totalorder %s624_s16, 3 }
  0x18   : > { %s138_s9 = scalar_lea.sflag [#allocation5], %s137_s27  ;;  %p488_p3 = pneg %p720_p0 }
  0x19   : > { %s499_s10 = scalar_lea.vmem %s150_s7, 128  ;;  %s626_s11 = smov [#allocation4]  }
  0x1a   : > { %p500_p5 = scmp.ne.s32.totalorder %s150_s7, %s499_s10  ;;  %s504_s17 = sshll.u32 %s626_s11, 4  ;;  %s505_s17 = int_to_ptr.vmem [resolvable:$false] %s504_s17 }
  0x1b   : > { %s506_s18 = scalar_lea.vmem %s505_s17, 256  ;;  %p507_p10 = scmp.lt.s32.totalorder %s150_s7, %s505_s17 }
  0x1c   : > { %p502_p6 = pnand %p500_p5, %p488_p3  ;;  %p508_p12 = scmp.lt.s32.totalorder %s506_s18, %s499_s10 }
  0x1e   : > { %p503_p7 = pneg %p502_p6  ;;  %p509_p4 = por %p508_p12, %p507_p10 }
  0x20   : > { %p510_p13 = pnand %p509_p4, %p503_p7 }
  0x22   : > { %513 = shalt.err (!%p510_p13)
}
  0x23   : > { %428 = dma.hbm_to_vmem [thread:$0]  (!%p720_p0), %s147_s5, 128, %s150_s7, %s138_s9  }
  0x24   : > { %p155_p11 = pnand %p405_p1, %p154_p2 }
  0x25   : > { %s735_s20 = sand.u32 (!%p155_p11), 1, %s608_s13  }
  0x26   : > { %158 = sbr.rel (%p155_p11) target bundleno = 100 (0x64), region = 24  ;;  %s738_s21 = sshll.u32 (!%p155_p11), %s735_s20, 3 }
  0x27   : > { %s161_s22 = scalar_lea.sflag (!%p155_p11), [#allocation5], %s735_s20  ;;  %s164_s27 = scalar_lea.vmem (!%p155_p11), [#allocation4], %s738_s21 }
  0x2b   : > { %591 = dma.done.wait (%p696_p8), %s161_s22, 128  }
  0x2c   : > { %593 = vsyncadd (%p696_p8), %s161_s22, 4294967168  ;;  %vm193_vm0 = vcmask 261120   ;;  %vm204_vm1 = vcmask 254976   ;;  %v190_v0 = vld [vmem:[%s164_s27] sm:$0xff]  ;;  %s189_s23 = scalar_lea.vmem [#allocation8], %s738_s21  ;;  %s413_s29 = sshll.u32 %s616_s15, 7 }
  0x2d   : > { %v409_v1 = vld [vmem:[%s164_s27] ss:$0 sm:$0xff]  ;;  %v410_v2 = vld [vmem:[%s164_s27 + $0x7] ss:$0 sm:$0xff]  ;;  %194 = vst.msk [vmem:[#allocation2 + $0x8] sm:$0xff] %vm193_vm0, %v190_v0  ;;  %s268_s28 = sshll.u32 %s189_s23, 4  ;;  %s757_s7 = scalar_lea.hbm %s838_s3, %s413_s29  ;;  %s752_s28 = int_to_ptr.vmem [resolvable:$true] %s268_s28 }
  0x2e   : > { %205 = vst.msk [vmem:[#allocation2 + $0x6] sm:$0x3] %vm204_vm1, %v409_v1  ;;  %211 = vst.msk [vmem:[#allocation2 + $0x10] sm:$0x3] %vm204_vm1, %v410_v2  ;;  %s182_s30 = scalar_lea.vmem [#allocation7], %s738_s21  ;;  %s765_s9 = scalar_lea.hbm %s837_s2, %s413_s29 }
  0x2f   : > { %s254_s4 = sshll.u32 %s182_s30, 4  ;;  %s240_s10 = scalar_lea.sflag [#allocation9], %s735_s20  ;;  %s759_s4 = int_to_ptr.vmem [resolvable:$true] %s254_s4 }
  0x30   : > { %s514_s11 = scalar_lea.vmem %s752_s28, 128  ;;  %s627_s17 = smov [#allocation8]  }
  0x31   : > { %p515_p8 = scmp.ne.s32.totalorder %s752_s28, %s514_s11  ;;  %s518_s18 = sshll.u32 %s627_s17, 4  ;;  %s519_s18 = int_to_ptr.vmem [resolvable:$false] %s518_s18 }
  0x32   : > { %s520_s22 = scalar_lea.vmem %s519_s18, 256  ;;  %p521_p0 = scmp.lt.s32.totalorder %s752_s28, %s519_s18 }
  0x33   : > { %p516_p11 = pnand %p515_p8, %p700_p9  ;;  %p522_p1 = scmp.lt.s32.totalorder %s520_s22, %s514_s11 }
  0x34   : > { %v219_v6 = vld [vmem:[#allocation2 + $0x8] sm:$0xff] }
  0x35   : > { %v214_v3 = vld [vmem:[#allocation2 + $0x6] sm:$0xff]  ;;  %p517_p12 = pneg %p516_p11  ;;  %p523_p2 = por %p522_p1, %p521_p0 }
  0x36   : > { %v217_v4 = vld [vmem:[#allocation2 + $0x7] sm:$0xff] }
  0x37   : > { %v218_v5 = vadd.f32 %v217_v4, %v214_v3  ;;  %v223_v8 = vld [vmem:[#allocation2 + $0x9] sm:$0xff]  ;;  %p524_p3 = pnand %p523_p2, %p517_p12 }
  0x38   : > { %v227_v10 = vld [vmem:[#allocation2 + $0xa] sm:$0xff] }
  0x39   : > { %v220_v7 = vadd.f32 %v219_v6, %v218_v5 }
  0x3b   : > { %v224_v9 = vadd.f32 %v223_v8, %v220_v7 }
  0x3d   : > { %v228_v11 = vadd.f32 %v227_v10, %v224_v9 }
  0x3f   : > { %v229_v12 = vmul.f32 0.2, %v228_v11 }
  0x41   : > { %231 = vst.msk [vmem:[%s189_s23] sm:$0xff] %vm193_vm0, %v229_v12  ;;  %v232_v13 = vsub.f32 %v190_v0, %v229_v12 }
  0x42   : > { %527 = shalt.err (!%p524_p3)
}
  0x43   : > { %s528_s27 = scalar_lea.hbm %s757_s7, 128  ;;  %s532_s5 = scalar_lea.hbm %s838_s3, 256 }
  0x44   : > { %p529_p5 = scmp.ne.s32.totalorder %s757_s7, %s528_s27  ;;  %p533_p10 = scmp.lt.s32.totalorder %s757_s7, %s838_s3 }
  0x45   : > { %p534_p4 = scmp.lt.s32.totalorder %s532_s5, %s528_s27 }
  0x46   : > { %p530_p6 = pnand %p529_p5, %p700_p9 }
  0x47   : > { %p535_p13 = por %p534_p4, %p533_p10 }
  0x48   : > { %p531_p7 = pneg %p530_p6 }
  0x4a   : > { %p536_p8 = pnand %p535_p13, %p531_p7 }
  0x4c   : > { %539 = shalt.err (!%p536_p8)
}
  0x4d   : > { %422 = dma.vmem_to_hbm [thread:$0]  (%p700_p9), %s752_s28, 128, %s757_s7, %s240_s10   ;;  %233 = vst.msk [vmem:[%s182_s30] sm:$0xff] %vm193_vm0, %v232_v13 }
  0x4e   : > { %s235_s8 = scalar_lea.sflag [#allocation6], %s735_s20  ;;  %s540_s11 = scalar_lea.vmem %s759_s4, 128 }
  0x4f   : > { %p541_p11 = scmp.ne.s32.totalorder %s759_s4, %s540_s11  ;;  %s628_s17 = smov [#allocation7]  }
  0x50   : > { %s544_s18 = sshll.u32 %s628_s17, 4  ;;  %s545_s18 = int_to_ptr.vmem [resolvable:$false] %s544_s18 }
  0x51   : > { %p542_p12 = pnand %p541_p11, %p700_p9  ;;  %s546_s22 = scalar_lea.vmem %s545_s18, 256 }
  0x52   : > { %p547_p1 = scmp.lt.s32.totalorder %s759_s4, %s545_s18  ;;  %p548_p2 = scmp.lt.s32.totalorder %s546_s22, %s540_s11 }
  0x53   : > { %p543_p0 = pneg %p542_p12 }
  0x54   : > { %p549_p3 = por %p548_p2, %p547_p1 }
  0x56   : > { %p550_p5 = pnand %p549_p3, %p543_p0 }
  0x58   : > { %553 = shalt.err (!%p550_p5)
}
  0x59   : > { %s554_s21 = scalar_lea.hbm %s765_s9, 128  ;;  %s558_s30 = scalar_lea.hbm %s837_s2, 256 }
  0x5a   : > { %p555_p6 = scmp.ne.s32.totalorder %s765_s9, %s554_s21  ;;  %p559_p4 = scmp.lt.s32.totalorder %s765_s9, %s837_s2 }
  0x5b   : > { %p560_p13 = scmp.lt.s32.totalorder %s558_s30, %s554_s21 }
  0x5c   : > { %p556_p7 = pnand %p555_p6, %p700_p9 }
  0x5d   : > { %p561_p8 = por %p560_p13, %p559_p4 }
  0x5e   : > { %p557_p10 = pneg %p556_p7 }
  0x60   : > { %p562_p11 = pnand %p561_p8, %p557_p10 }
  0x62   : > { %565 = shalt.err (!%p562_p11)
}
  0x63   : > { %421 = dma.vmem_to_hbm [thread:$0]  (%p700_p9), %s759_s4, 128, %s765_s9, %s235_s8  }
  0x64 PF: > { %s280_s27 = sand.u32 1, %s604_s12   ;;  %p844_p12 = scmp.ne.s32.totalorder %s842_s26, 0 }
  0x65   : > { %p845_p0 = scmp.ge.s32.totalorder %s624_s16, 2  ;;  %s281_s23 = scalar_lea.sflag [#allocation6], %s280_s27 }
  0x67   : > { %p430_p1 = pnand %p845_p0, %p844_p12 }
  0x69   : > { %p431_p2 = pneg %p430_p1 }
  0x6b   : > { %595 = dma.done.wait (%p431_p2), %s281_s23, 128  }
  0x6c   : > { %597 = vsyncadd (%p431_p2), %s281_s23, 4294967168  ;;  %s290_s29 = scalar_lea.sflag [#allocation9], %s280_s27 }
  0x6d   : > { %599 = dma.done.wait (%p431_p2), %s290_s29, 128  }
  0x6e   : > { %601 = vsyncadd (%p431_p2), %s290_s29, 4294967168  ;;  %s23_s16 = sadd.s32 1, %s624_s16   ;;  %s846_s12 = smov %s608_s13 }
  0x6f   : > { %p20_p3 = scmp.ge.s32.totalorder %s23_s16, 4   ;;  %s847_s13 = smov %s612_s14 }
  0x70   : > { %s848_s14 = smov %s705_s25  ;;  %s849_s15 = smov %s620_s1 }
  0x71   : > { %s850_s1 = smov %s852_s19  ;;  %22 = sbr.rel (!%p20_p3) target bundleno = 8 (0x8), region = 96 }
  0x76   :  { %295 = vsyncpa [#allocation5], 1 }
  0x77   :  { %297 = vsyncpa [#allocation5 + $0x1], 1 }
  0x78   :  { %298 = vsyncpa [#allocation6], 1 }
  0x79   :  { %300 = vsyncpa [#allocation6 + $0x1], 1 }
  0x7a   :  { %301 = vsyncpa [#allocation9], 1 }
  0x7b   :  { %303 = vsyncpa [#allocation9 + $0x1], 1 }
  0x7c   :  { %304 = vsyncmov [#allocation3] }
  0x7f   :  { %s305_s24 = vpop.sfrf %304 }
  0x80   :  { %p417_p9 = scmp.ne.s32.totalorder %s305_s24, 0 }
  0x82   :  { %309 = shalt.err (%p417_p9)  }
  0x83   :  { %311 = vsyncmov [#allocation3 + $0x1] }
  0x86   :  { %s312_s26 = vpop.sfrf %311 }
  0x87   :  { %p418_p5 = scmp.ne.s32.totalorder %s312_s26, 0 }
  0x89   :  { %316 = shalt.err (%p418_p5)  }

</bundles_post_ra>
